<compile_context>
chip_gen: v5e
topology: v5e:2x2
jax: 0.10.0
libtpu: 0.0.40
codegen_flags: <defaults>
</compile_context>

<pallas_src>
import functools

import jax
import jax.numpy as jnp
import numpy as np
from jax.experimental import pallas as pl
from jax.experimental.pallas import tpu as pltpu


def _round_up(n, m):
    return ((n + m - 1) // m) * m


def _vmem_budget():
    """Per-generation VMEM budget for residency/tiling + the scoped limit."""
    try:
        phys = int(pltpu.get_tpu_info().vmem_capacity_bytes)
    except Exception:
        phys = 64 * 1024 * 1024          # v7x (smallest VMEM) as safe fallback
    budget = max(24 << 20, min(int(phys * 0.65), 96 << 20))
    limit = max(32 << 20, min(int(phys * 0.85), budget + (16 << 20)))
    return int(budget), int(limit)


def _choose_config(tb, f_pad, h_pad, in_bytes, budget, allow_resident, max_th):
    """Pick (TH, resident_protos) fitting the VMEM budget, or None."""
    fixed = 2 * tb * f_pad * in_bytes        # x tile (double-buffered)
    fixed += 2 * tb * 128 * 4                # ||x||^2 block (lane-padded)
    fixed += tb * 128 * 4                    # head accumulator scratch
    fixed += 2 * tb * 128 * 4                # output block (lane-padded)
    th_candidates = [t for t in (512, 384, 256, 128)
                     if t <= max_th and t <= h_pad and h_pad % t == 0]
    if not th_candidates:
        th_candidates = [128]
    modes = (True, False) if allow_resident else (False,)
    for resident in modes:
        for th in th_candidates:
            inter = 6 * tb * th * 4          # [TB, TH] f32 intermediates headroom
            if resident:
                proto = 2 * f_pad * h_pad * in_bytes + 2 * 8 * h_pad * 4
            else:
                proto = 2 * f_pad * th * in_bytes + 2 * 8 * th * 4
            if fixed + inter + proto <= budget:
                return th, resident
    return None


def _kernel_lr_kernel(x_ref, xsq_ref, pT_ref, pw_ref, o_ref, acc_ref, *,
                      neg_inv_two_sigma_sq, th, resident):
    """One (B-tile, H-tile) grid step.

    x_ref:   [TB, F_pad]          batch tile (bf16 or f32), resident across H
    xsq_ref: [TB, 1]  f32         precomputed ||x||^2 (resident across H)
    pT_ref:  resident: [nH, F_pad, TH]  else: [F_pad, TH]  prototypes^T
    pw_ref:  resident: [nH, 2, TH]      else: [2, TH]      [||p||^2 ; w] rows
    o_ref:   [TB, 1]  f32         output tile (written once, at the last H tile)
    acc_ref: [TB, 128] f32        lane-dense head accumulator across H tiles
    """
    h = pl.program_id(1)

    @pl.when(h == 0)
    def _init():
        acc_ref[...] = jnp.zeros_like(acc_ref)

    if resident:
        pT = pT_ref[h]            # [F_pad, TH], dynamic leading-dim index
        pw = pw_ref[h]            # [2, TH]
    else:
        pT = pT_ref[...]
        pw = pw_ref[...]
    p_sq = pw[0:1, :]             # [1, TH] f32
    w = pw[1:2, :]                # [1, TH] f32

    # ||x - p||^2 = ||x||^2 + ||p||^2 - 2 x.p  (cross term on the MXU, f32 acc)
    xp = jnp.dot(x_ref[...], pT, preferred_element_type=jnp.float32)  # [TB, TH]
    d2 = xsq_ref[...] + p_sq - 2.0 * xp
    d2 = jnp.maximum(d2, 0.0)                                         # safety

    # Gaussian kernel activation (constant folded at trace time; EUP sqrt/exp).
    k = jnp.exp(jnp.sqrt(d2) * neg_inv_two_sigma_sq)                  # [TB, TH]
    kw = k * w

    # Lane-dense head accumulation: only VPU adds per step; the cross-lane
    # XLU reduction is deferred to the finalize branch.
    partial = kw[:, 0:128]
    for j in range(1, th // 128):
        partial = partial + kw[:, j * 128:(j + 1) * 128]
    acc_ref[...] += partial

    @pl.when(h == pl.num_programs(1) - 1)
    def _finalize():
        o_ref[...] = jnp.sum(acc_ref[...], axis=-1, keepdims=True)


def kernel_lr_forward(x, prototypes, linear_weight, sigma, *,
                      use_bf16=True, allow_resident=True,
                      max_tb=512, max_th=512):
    """Full Kernel_LR forward pass.

    Args:
      x:             [B, F] float32 batch.
      prototypes:    [H, F] float32 stored samples of the kernel layer.
      linear_weight: [1, H] float32 (torch nn.Linear(H, 1, bias=False).weight).
      sigma:         python float.
      use_bf16:      cast the MXU cross term to bf16 (f32 accumulation).
      allow_resident: allow keeping all prototypes resident in VMEM.
    Returns:
      [B, 1] float32.
    """
    x = jnp.asarray(x, jnp.float32)
    prototypes = jnp.asarray(prototypes, jnp.float32)
    linear_weight = jnp.asarray(linear_weight, jnp.float32).reshape(1, -1)

    B, F = x.shape
    H, F2 = prototypes.shape
    assert F == F2, "feature dims must match"
    assert linear_weight.shape == (1, H)

    F_pad = _round_up(F, 128)
    H_pad = _round_up(H, 128)

    # --- B tile (split so >=2 tiles exist for the v7x second TensorCore) ---
    B8 = _round_up(B, 8)
    if B8 <= max_tb:
        if B8 >= 256:
            B_pad = _round_up(B, 16)
            TB = B_pad // 2
        else:
            B_pad, TB = B8, B8
    else:
        TB = max_tb
        B_pad = _round_up(B, TB)

    in_bytes = 2 if use_bf16 else 4
    budget, vmem_limit = _vmem_budget()

    # --- H tile + prototype residency, VMEM-budget aware (shrink TH, then TB) ---
    cfg = _choose_config(TB, F_pad, H_pad, in_bytes, budget, allow_resident, max_th)
    while cfg is None and TB > 8:
        TB = max(8, (TB // 2) // 8 * 8)
        B_pad = _round_up(B, TB)
        cfg = _choose_config(TB, F_pad, H_pad, in_bytes, budget, allow_resident, max_th)
    if cfg is None:
        # TODO(synk): add an F grid axis with a [TB, TH] f32 cross-term
        # accumulator for extremely large feature counts.
        cfg = (128, False)
    TH, resident = cfg
    nH = H_pad // TH

    # --- operands (norms in f32; matmul operands optionally bf16) ---
    x_f32 = jnp.pad(x, ((0, B_pad - B), (0, F_pad - F)))
    x_sq = jnp.sum(x_f32 * x_f32, axis=-1, keepdims=True)           # [B_pad, 1]
    p_f32 = jnp.pad(prototypes, ((0, H_pad - H), (0, F_pad - F)))
    p_sq = jnp.sum(p_f32 * p_f32, axis=-1)[None, :]                 # [1, H_pad]
    w_row = jnp.pad(linear_weight, ((0, 0), (0, H_pad - H)))        # zero pad -> no-op
    pw = jnp.concatenate([p_sq, w_row], axis=0)                     # [2, H_pad] f32

    mm_dtype = jnp.bfloat16 if use_bf16 else jnp.float32
    x_in = x_f32.astype(mm_dtype)                                   # [B_pad, F_pad]
    pT = p_f32.T.astype(mm_dtype)                                   # [F_pad, H_pad]

    if resident:
        # Blocked layout so the kernel picks H tiles via a leading-dim index;
        # constant index_map => prototypes DMA'd from HBM exactly once.
        pT_in = pT.reshape(F_pad, nH, TH).transpose(1, 0, 2)        # [nH, F_pad, TH]
        pw_in = pw.reshape(2, nH, TH).transpose(1, 0, 2)            # [nH, 2, TH]
        proto_spec = pl.BlockSpec((nH, F_pad, TH), lambda b, h: (0, 0, 0))
        pw_spec = pl.BlockSpec((nH, 2, TH), lambda b, h: (0, 0, 0))
    else:
        pT_in, pw_in = pT, pw
        proto_spec = pl.BlockSpec((F_pad, TH), lambda b, h: (0, h))
        pw_spec = pl.BlockSpec((2, TH), lambda b, h: (0, h))

    kernel = functools.partial(
        _kernel_lr_kernel,
        neg_inv_two_sigma_sq=-1.0 / (2.0 * float(sigma) ** 2),
        th=TH, resident=resident)

    grid = (B_pad // TB, H_pad // TH)   # H (reduction) axis last

    out_padded = pl.pallas_call(
        kernel,
        out_shape=jax.ShapeDtypeStruct((B_pad, 1), jnp.float32),
        grid_spec=pltpu.PrefetchScalarGridSpec(
            num_scalar_prefetch=0,
            grid=grid,
            in_specs=[
                pl.BlockSpec((TB, F_pad), lambda b, h: (b, 0)),   # x (resident over H)
                pl.BlockSpec((TB, 1), lambda b, h: (b, 0)),       # ||x||^2
                proto_spec,                                       # prototypes^T
                pw_spec,                                          # [||p||^2 ; w]
            ],
            out_specs=pl.BlockSpec((TB, 1), lambda b, h: (b, 0)),
            scratch_shapes=[pltpu.VMEM((TB, 128), jnp.float32)],
        ),
        compiler_params=pltpu.CompilerParams(
            dimension_semantics=("parallel", "arbitrary"),
            vmem_limit_bytes=vmem_limit,
        ),
    )(x_in, x_sq, pT_in, pw_in)

    return out_padded[:B]


def _reference_forward(x, prototypes, linear_weight, sigma):
    """Pure-JAX reference mirroring the torch module literally."""
    diff = x[:, None, :] - prototypes[None, :, :]               # [B, H, F]
    dist = jnp.sqrt(jnp.sum(diff * diff, axis=-1))              # [B, H]
    k = jnp.exp(-dist / (2.0 * float(sigma) ** 2))              # [B, H]
    return k @ linear_weight.reshape(-1, 1)                     # [B, 1]


if __name__ == "__main__":
    # Small, deterministic synthetic setup.
    # In Kernel_LR, hidden_dim == number of training samples (prototypes).
    B, F, H, sigma = 8, 16, 32, 1.5
    key = jax.random.PRNGKey(0)
    kx, kp, kw = jax.random.split(key, 3)
    x = jax.random.normal(kx, (B, F), dtype=jnp.float32)
    prototypes = jax.random.normal(kp, (H, F), dtype=jnp.float32)
    bound = 1.0 / np.sqrt(H)
    linear_weight = jax.random.uniform(
        kw, (1, H), minval=-bound, maxval=bound, dtype=jnp.float32)

    ref = _reference_forward(x, prototypes, linear_weight, sigma)

    # Default path: bf16 MXU cross term, prototypes resident in VMEM.
    out = jax.block_until_ready(kernel_lr_forward(x, prototypes, linear_weight, sigma))
    assert out.shape == (B, 1)
    np.testing.assert_allclose(np.asarray(out), np.asarray(ref), rtol=2e-2, atol=2e-3)

    # Exact-f32 path, tight tolerance.
    out_f32 = jax.block_until_ready(
        kernel_lr_forward(x, prototypes, linear_weight, sigma, use_bf16=False))
    np.testing.assert_allclose(np.asarray(out_f32), np.asarray(ref), rtol=1e-4, atol=1e-5)

    # Multi-tile case (2 B tiles x 5 H tiles) exercising the accumulator and
    # both the resident and streaming prototype paths, plus padding slicing.
    B2, F2, H2, sigma2 = 272, 50, 600, 2.0
    k2 = jax.random.split(jax.random.PRNGKey(1), 3)
    x2 = jax.random.normal(k2[0], (B2, F2), dtype=jnp.float32)
    p2 = jax.random.normal(k2[1], (H2, F2), dtype=jnp.float32)
    b2 = 1.0 / np.sqrt(H2)
    w2 = jax.random.uniform(k2[2], (1, H2), minval=-b2, maxval=b2, dtype=jnp.float32)
    ref2 = _reference_forward(x2, p2, w2, sigma2)

    o2_res = jax.block_until_ready(
        kernel_lr_forward(x2, p2, w2, sigma2, use_bf16=False))
    np.testing.assert_allclose(np.asarray(o2_res), np.asarray(ref2), rtol=1e-4, atol=1e-5)

    o2_stream = jax.block_until_ready(
        kernel_lr_forward(x2, p2, w2, sigma2, use_bf16=False, allow_resident=False))
    np.testing.assert_allclose(np.asarray(o2_stream), np.asarray(ref2), rtol=1e-4, atol=1e-5)

    # TODO(synk): Kernel_Layer._k_means (host-side reset_parameters init) is
    # not part of the forward pass and is not implemented as a kernel.
    print("KERNEL_OK")
</pallas_src>

<mosaic_0001>
module attributes {stable_mosaic.version = 11 : i64} {
  func.func @_kernel_lr_kernel(%arg0: i32, %arg1: i32, %arg2: memref<8x128xbf16, #tpu.memory_space<vmem>>, %arg3: memref<8x1xf32, #tpu.memory_space<vmem>>, %arg4: memref<1x128x128xbf16, #tpu.memory_space<vmem>>, %arg5: memref<1x2x128xf32, #tpu.memory_space<vmem>>, %arg6: memref<8x1xf32, #tpu.memory_space<vmem>>, %arg7: memref<8x128xf32, #tpu.memory_space<vmem>>) attributes {dimension_semantics = [#tpu.dimension_semantics<parallel>, #tpu.dimension_semantics<arbitrary>], iteration_bounds = array<i64: 1, 1>, scalar_prefetch = 0 : i64, scratch_operands = 1 : i64, tpu.core_type = #tpu.core_type<tc>, window_params = [{transform_indices = @transform_0, window_bounds = array<i64: 8, 128>}, {transform_indices = @transform_1, window_bounds = array<i64: 8, 1>}, {pipeline_mode = #tpu.pipeline_mode<synchronous>, transform_indices = @transform_2, window_bounds = array<i64: 1, 128, 128>}, {pipeline_mode = #tpu.pipeline_mode<synchronous>, transform_indices = @transform_3, window_bounds = array<i64: 1, 2, 128>}, {transform_indices = @transform_4, window_bounds = array<i64: 8, 1>}]} {
    %c0_i32 = arith.constant 0 : i32
    %0 = arith.cmpi eq, %arg1, %c0_i32 : i32
    %1 = arith.extui %0 : i1 to i32
    %c0_i32_0 = arith.constant 0 : i32
    %2 = arith.cmpi ne, %1, %c0_i32_0 : i32
    scf.if %2 {
      %cst_17 = arith.constant 0.000000e+00 : f32
      %34 = vector.broadcast %cst_17 : f32 to vector<8x128xf32>
      %c0_18 = arith.constant 0 : index
      %c0_19 = arith.constant 0 : index
      %35 = vector.load %arg7[%c0_18, %c0_19] : memref<8x128xf32, #tpu.memory_space<vmem>>, vector<8x128xf32>
      tpu.vector_store %arg7[%c0_18, %c0_19], %34 {strides = array<i32>} : memref<8x128xf32, #tpu.memory_space<vmem>>, vector<8x128xf32>,
    } else {
    }
    %3 = arith.index_cast %arg1 : i32 to index
    %c0 = arith.constant 0 : index
    %c0_1 = arith.constant 0 : index
    %4 = vector.load %arg4[%3, %c0, %c0_1] : memref<1x128x128xbf16, #tpu.memory_space<vmem>>, vector<1x128x128xbf16>
    %5 = vector.shape_cast %4 : vector<1x128x128xbf16> to vector<128x128xbf16>
    %6 = arith.index_cast %arg1 : i32 to index
    %c0_2 = arith.constant 0 : index
    %c0_3 = arith.constant 0 : index
    %7 = vector.load %arg5[%6, %c0_2, %c0_3] : memref<1x2x128xf32, #tpu.memory_space<vmem>>, vector<1x2x128xf32>
    %8 = vector.shape_cast %7 : vector<1x2x128xf32> to vector<2x128xf32>
    %9 = vector.extract_strided_slice %8 {offsets = [0, 0], sizes = [1, 128], strides = [1, 1]} : vector<2x128xf32> to vector<1x128xf32>
    %10 = vector.extract_strided_slice %8 {offsets = [1, 0], sizes = [1, 128], strides = [1, 1]} : vector<2x128xf32> to vector<1x128xf32>
    %c0_4 = arith.constant 0 : index
    %c0_5 = arith.constant 0 : index
    %11 = vector.load %arg2[%c0_4, %c0_5] : memref<8x128xbf16, #tpu.memory_space<vmem>>, vector<8x128xbf16>
    %cst = arith.constant dense<0.000000e+00> : vector<8x128xf32>
    %12 = tpu.matmul %11, %5, %cst {dimension_numbers = #tpu.dot_dimension_numbers<[1], [0], [0], [1], [0, 0, 1, 1], [], []>} : vector<8x128xbf16>, vector<128x128xbf16>, vector<8x128xf32> -> vector<8x128xf32>
    %c0_6 = arith.constant 0 : index
    %c0_7 = arith.constant 0 : index
    %13 = vector.load %arg3[%c0_6, %c0_7] : memref<8x1xf32, #tpu.memory_space<vmem>>, vector<8x1xf32>
    %14 = vector.broadcast %13 : vector<8x1xf32> to vector<8x128xf32>
    %15 = vector.broadcast %9 : vector<1x128xf32> to vector<8x128xf32>
    %16 = arith.addf %14, %15 : vector<8x128xf32>
    %cst_8 = arith.constant 2.000000e+00 : f32
    %17 = vector.broadcast %cst_8 : f32 to vector<8x128xf32>
    %18 = arith.mulf %17, %12 : vector<8x128xf32>
    %19 = arith.subf %16, %18 : vector<8x128xf32>
    %cst_9 = arith.constant 0.000000e+00 : f32
    %20 = vector.broadcast %cst_9 : f32 to vector<8x128xf32>
    %21 = arith.maximumf %19, %20 : vector<8x128xf32>
    %22 = math.sqrt %21 : vector<8x128xf32>
    %cst_10 = arith.constant -0.222222224 : f32
    %23 = vector.broadcast %cst_10 : f32 to vector<8x128xf32>
    %24 = arith.mulf %22, %23 : vector<8x128xf32>
    %25 = math.exp %24 : vector<8x128xf32>
    %26 = vector.broadcast %10 : vector<1x128xf32> to vector<8x128xf32>
    %27 = arith.mulf %25, %26 : vector<8x128xf32>
    %c0_11 = arith.constant 0 : index
    %c0_12 = arith.constant 0 : index
    %28 = vector.load %arg7[%c0_11, %c0_12] : memref<8x128xf32, #tpu.memory_space<vmem>>, vector<8x128xf32>
    %29 = arith.addf %28, %27 : vector<8x128xf32>
    %c0_13 = arith.constant 0 : index
    %c0_14 = arith.constant 0 : index
    %30 = vector.load %arg7[%c0_13, %c0_14] : memref<8x128xf32, #tpu.memory_space<vmem>>, vector<8x128xf32>
    tpu.vector_store %arg7[%c0_13, %c0_14], %29 {strides = array<i32>} : memref<8x128xf32, #tpu.memory_space<vmem>>, vector<8x128xf32>,
    %c0_i32_15 = arith.constant 0 : i32
    %31 = arith.cmpi eq, %arg1, %c0_i32_15 : i32
    %32 = arith.extui %31 : i1 to i32
    %c0_i32_16 = arith.constant 0 : i32
    %33 = arith.cmpi ne, %32, %c0_i32_16 : i32
    scf.if %33 {
      %c0_17 = arith.constant 0 : index
      %c0_18 = arith.constant 0 : index
      %34 = vector.load %arg7[%c0_17, %c0_18] : memref<8x128xf32, #tpu.memory_space<vmem>>, vector<8x128xf32>
      %cst_19 = arith.constant dense<0.000000e+00> : vector<8xf32>
      %35 = vector.multi_reduction <add>, %34, %cst_19 [1] : vector<8x128xf32> to vector<8xf32>
      %36 = vector.shape_cast %35 : vector<8xf32> to vector<8x1xf32>
      %c0_20 = arith.constant 0 : index
      %c0_21 = arith.constant 0 : index
      %37 = vector.load %arg6[%c0_20, %c0_21] : memref<8x1xf32, #tpu.memory_space<vmem>>, vector<8x1xf32>
      tpu.vector_store %arg6[%c0_20, %c0_21], %36 {strides = array<i32>} : memref<8x1xf32, #tpu.memory_space<vmem>>, vector<8x1xf32>,
    } else {
    }
    return
  }
  func.func @transform_0(%arg0: i32, %arg1: i32) -> (i32, i32) {
    %c0_i32 = arith.constant 0 : i32
    %c0_i32_0 = arith.constant 0 : i32
    return %arg0, %c0_i32 : i32, i32
  }
  func.func @transform_1(%arg0: i32, %arg1: i32) -> (i32, i32) {
    %c0_i32 = arith.constant 0 : i32
    %c0_i32_0 = arith.constant 0 : i32
    return %arg0, %c0_i32 : i32, i32
  }
  func.func @transform_2(%arg0: i32, %arg1: i32) -> (i32, i32, i32) {
    %c0_i32 = arith.constant 0 : i32
    %c0_i32_0 = arith.constant 0 : i32
    %c0_i32_1 = arith.constant 0 : i32
    %c0_i32_2 = arith.constant 0 : i32
    return %c0_i32, %c0_i32_0, %c0_i32_1 : i32, i32, i32
  }
  func.func @transform_3(%arg0: i32, %arg1: i32) -> (i32, i32, i32) {
    %c0_i32 = arith.constant 0 : i32
    %c0_i32_0 = arith.constant 0 : i32
    %c0_i32_1 = arith.constant 0 : i32
    %c0_i32_2 = arith.constant 0 : i32
    return %c0_i32, %c0_i32_0, %c0_i32_1 : i32, i32, i32
  }
  func.func @transform_4(%arg0: i32, %arg1: i32) -> (i32, i32) {
    %c0_i32 = arith.constant 0 : i32
    %c0_i32_0 = arith.constant 0 : i32
    return %arg0, %c0_i32 : i32, i32
  }
}

</mosaic_0001>

<bundles_post_ra>
// kernel: tpu_custom_call.1
= control target key start
LH: loop header
LB: loop body
LE: loop exit
PB: predicated region body
PF: predicated region fallthrough
CT: control target
= control target key end

     0   :  { %9 = vsyncpa [#allocation4], 0  ;;  %s241_s18 = smov [#allocation3]   ;;  %s242_s20 = smov 64   ;;  %s285_s0 = inlined_call_operand.vmem [shape: bf16[8,128], index: 0, kind: input, shape index: {}]   ;;  %s286_s1 = inlined_call_operand.vmem [shape: f32[8,1], index: 1, kind: input, shape index: {}]   ;;  %s287_s2 = inlined_call_operand.hbm [shape: bf16[1,128,128], index: 2, kind: input, shape index: {}]   ;;  %s288_s3 = inlined_call_operand.vmem [shape: f32[1,2,128], index: 3, kind: input, shape index: {}]   ;;  %s289_s4 = inlined_call_operand.vmem [shape: f32[8,1], index: 4, kind: output, shape index: {}]  }
   0x1   :  { %s18_s17 = sshll.u32 %s287_s2, 4  ;;  %s20_s19 = sshll.u32 %s241_s18, 4  ;;  %s19_s17 = int_to_ptr.hbm [resolvable:$true] %s18_s17  ;;  %s21_s19 = int_to_ptr.vmem [resolvable:$true] %s20_s19 }
   0x2   :  { %s243_s21 = smov 4  }
   0x3   :  { %26 = dma.hbm_to_vmem [thread:$0]  %s19_s17, 1024, %s21_s19, [#allocation4], %s242_s20, %s242_s20, %s243_s21  }
   0x4   :  { %239 = dma.done.wait [#allocation4], 1024  }
   0x5   :  { %240 = vsyncadd [#allocation4], 4294966272  ;;  %v205_v0 = vld [vmem:[#allocation3 + $0x38] sm:$0xff]  ;;  %v204_v1 = vld [vmem:[#allocation3 + $0x30] sm:$0xff]  ;;  %v244_v2 = vmov 0   ;;  %vm159_vm2 = vcmask 7168  }
   0x6   :  { %109 = vmatpush.bf16.msra.mxu0 %v205_v0  ;;  %210 = vset.pattern.permute.xlu0 %v244_v2  ;;  %v122_v3 = vld [vmem:[%s286_s1] sm:$0xff]  ;;  %v203_v4 = vld [vmem:[#allocation3 + $0x28] sm:$0xff]  ;;  %v201_v6 = vld [vmem:[#allocation3 + $0x18] sm:$0xff] }
   0x7   :  { %125 = vperm.xlu0 %210, %v122_v3   ;;  %v202_v5 = vld [vmem:[#allocation3 + $0x20] sm:$0xff]  ;;  %v200_v7 = vld [vmem:[#allocation3 + $0x10] sm:$0xff]  ;;  %v199_v8 = vld [vmem:[#allocation3 + $0x8] sm:$0xff] }
   0x8   :  { %v198_v9 = vld [vmem:[#allocation3] sm:$0xff] }
   0x9   :  { %v60_v10 = vld [vmem:[%s285_s0] sm:$0xf] }
   0xa   :  { %110 = vmatpush.bf16.msra.mxu0 %v204_v1  ;;  %v59_v11 = vld [vmem:[%s288_s3] sm:$0x3] }
   0xb   :  { %v128_v12 = vperm.slane %v59_v11, 0  ;;  %v148_v32 = vperm.slane %v59_v11, 1 }
   0xe   :  { %111 = vmatpush.bf16.msra.mxu0 %v203_v4 }
  0x12   :  { %112 = vmatpush.bf16.msra.mxu0 %v202_v5 }
  0x16   :  { %113 = vmatpush.bf16.msra.mxu0 %v201_v6 }
  0x1a   :  { %114 = vmatpush.bf16.msra.mxu0 %v200_v7 }
  0x1e   :  { %115 = vmatpush.bf16.msra.mxu0 %v199_v8 }
  0x22   :  { %116 = vmatpush.bf16.msra.mxu0 %v198_v9 }
  0x25   :  { %117 = vmatmul.bf16.vlgmr.msra.gmra.mxu0 %v60_v10 }
  0x79   :  { %v126_v13 = vpop.permute.xlu0 %125 }
  0x7a   :  { %v129_v14 = vadd.f32 %v128_v12, %v126_v13 }
  0xa2   :  { %v118_v15 = vpop.f32.mrf.mxu0 }
  0xa3   :  { %v130_v16 = vmul.f32 2.0, %v118_v15 }
  0xa5   :  { %v131_v17 = vsub.f32 %v129_v14, %v130_v16 }
  0xa7   :  { %v132_v18 = vmax.f32 %v131_v17, 0.0 }
  0xa9   :  { %211 = vrsqrt.f32 %v132_v18  ;;  %vm140_vm0 = vcmp.eq.f32.partialorder %v132_v18, inf  ;;  %v143_v27 = vand.u32 2147483648, %v132_v18  ;;  %vm142_vm1 = vcmp.eq.f32.partialorder %v132_v18, 0.0 }
  0xaa   :  { %v120_v19 = vpop.f32.mrf.mxu0 }
  0xaf   :  { %v212_v20 = vpop.eup %211 }
  0xb0   :  { %v134_v21 = vmul.f32 %v212_v20, %v132_v18 }
  0xb2   :  { %v135_v22 = vmul.f32 %v212_v20, %v134_v21 }
  0xb4   :  { %v136_v23 = vmul.f32 0.5, %v135_v22 }
  0xb6   :  { %v137_v24 = vsub.f32 1.5, %v136_v23 }
  0xb8   :  { %v138_v25 = vmul.f32 %v212_v20, %v137_v24 }
  0xba   :  { %v139_v26 = vmul.f32 %v138_v25, %v132_v18 }
  0xbc   :  { %v141_v28 = vsel %vm140_vm0, %v132_v18, %v139_v26 }
  0xbd   :  { %v144_v29 = vsel %vm142_vm1, %v143_v27, %v141_v28 }
  0xbe   :  { %v145_v30 = vmul.f32 -0.22222222, %v144_v29 }
  0xc0   :  { %v146_v31 = vmul.f32 1.442695, %v145_v30 }
  0xc2   :  { %213 = vpow2.f32 %v146_v31 }
  0xc8   :  { %v214_v33 = vpop.eup %213 }
  0xc9   :  { %v149_v34 = vmul.f32 %v214_v33, %v148_v32 }
  0xcb   :  { %157 = vadd.xlane.f32.xlu0 %v149_v34 }
 0x13e   :  { %v158_v35 = vpop.xlane.xlu0 %157 }
 0x13f   :  { %160 = vst.msk [vmem:[%s289_s4] sm:$0xff] %vm159_vm2, %v158_v35 }
 0x140   :  { %165 = vsyncpa [#allocation4], 1 }

</bundles_post_ra>
